<compile_context>
chip_gen: v5e
topology: v5e:2x2
jax: 0.10.0
libtpu: 0.0.40
codegen_flags: <defaults>
</compile_context>

<pallas_src>
import jax
import jax.numpy as jnp
from jax import lax
from jax.experimental import pallas as pl
from jax.experimental.pallas import tpu as pltpu


def _stacked_matmul_bn_relu_kernel(x_ref, w_ref, shift_ref, o_ref):
    # Fast path (p == 0, K <= s): all phases share the compact input.
    #   x_ref:     (1, Cin, Mt)     bf16 compact input tile (lane-dense spatial)
    #   w_ref:     (P*Cout, Cin)    bf16 stacked per-phase weights (BN scale folded in)
    #   shift_ref: (P*Cout, 1)      f32 folded BN shift (tiled per phase)
    #   o_ref:     (1, P*Cout, Mt)  f32 lane-dense phase-stacked output tile
    acc = jnp.dot(w_ref[...], x_ref[0], preferred_element_type=jnp.float32)
    o_ref[0] = jnp.maximum(acc + shift_ref[...], 0.0).astype(o_ref.dtype)


def _phase_batched_matmul_bn_relu_kernel(x_ref, w_ref, shift_ref, o_ref):
    # General path: per-phase im2col input, one batched matmul over the phase axis.
    #   x_ref:     (1, P, Ce, Mt)   bf16 per-phase im2col input tile
    #   w_ref:     (P, Cout, Ce)    bf16 per-phase weights (BN scale folded in)
    #   shift_ref: (Cout, 1)        f32 folded BN shift
    #   o_ref:     (1, P, Cout, Mt) f32
    acc = jnp.einsum("poc,pcm->pom", w_ref[...], x_ref[0],
                     preferred_element_type=jnp.float32)
    o_ref[0] = jnp.maximum(acc + shift_ref[...], 0.0).astype(o_ref.dtype)


def _spatial_tile(M):
    """Largest lane-dense (multiple-of-128) tile dividing M, capped for v7x VMEM."""
    if M <= 4096:
        return M
    for t in (4096, 2048, 1024, 512, 256, 128):
        if M % t == 0:
            return t
    return M


def basic_trans_conv2d(x_nchw, w_t, gamma, beta, run_mean, run_var,
                       *, stride, padding, eps=1e-3):
    """Forward of BasicTransConv2d.  x_nchw: (N, Cin, H, W), w_t: (Cin, Cout, K, K)."""
    N, Cin, H, W = x_nchw.shape
    Cin_w, Cout, K, _ = w_t.shape
    assert Cin == Cin_w
    s, p = int(stride), int(padding)
    assert s >= 1 and p >= 0
    Hout = (H - 1) * s - 2 * p + K
    Wout = (W - 1) * s - 2 * p + K
    assert Hout > 0 and Wout > 0

    # Fold inference-mode BatchNorm: y = conv * inv_std + (beta - mean * inv_std).
    inv_std = gamma / jnp.sqrt(run_var + eps)
    w_eff = w_t.astype(jnp.float32) * inv_std.reshape(1, Cout, 1, 1)     # scale -> weights
    shift2d = (beta - run_mean * inv_std).reshape(Cout, 1).astype(jnp.float32)

    x = x_nchw.astype(jnp.bfloat16)          # bf16 inputs; accumulate in f32 on the MXU

    P = s * s
    My, Mx = -(-Hout // s), -(-Wout // s)    # output rows/cols per phase (ceil)
    M = My * Mx
    Mt = _spatial_tile(M)
    n_mt = M // Mt

    compiler_params = pltpu.CompilerParams(
        dimension_semantics=("parallel", "parallel"),
        vmem_limit_bytes=48 * 1024 * 1024)

    if p == 0 and K <= s:
        # Fast path: output phase (jy, jx) uses exactly one kernel tap (ky, kx)=(jy, jx)
        # (a zero tap if jy >= K or jx >= K) applied to the un-shifted compact input.
        assert (My, Mx) == (H, W)
        Xc = x.reshape(N, Cin, M)                                  # free reshape, shared by phases
        w_sp = w_eff
        if K < s:
            w_sp = jnp.pad(w_eff, ((0, 0), (0, 0), (0, s - K), (0, s - K)))
        # Stacked LHS: row index = (jy*s + jx)*Cout + co.
        Wst = jnp.transpose(w_sp, (2, 3, 1, 0)).reshape(P * Cout, Cin).astype(jnp.bfloat16)
        shift_st = jnp.tile(shift2d, (P, 1))                       # (P*Cout, 1)

        out_k = pl.pallas_call(
            _stacked_matmul_bn_relu_kernel,
            out_shape=jax.ShapeDtypeStruct((N, P * Cout, M), jnp.float32),
            grid_spec=pltpu.PrefetchScalarGridSpec(
                num_scalar_prefetch=0,
                grid=(N, n_mt),
                in_specs=[
                    pl.BlockSpec((1, Cin, Mt), lambda n, m: (n, 0, m)),
                    pl.BlockSpec((P * Cout, Cin), lambda n, m: (0, 0)),     # resident
                    pl.BlockSpec((P * Cout, 1), lambda n, m: (0, 0)),       # resident
                ],
                out_specs=pl.BlockSpec((1, P * Cout, Mt), lambda n, m: (n, 0, m)),
            ),
            compiler_params=compiler_params,
        )(Xc, Wst, shift_st)
        out = out_k.reshape(N, s, s, Cout, My, Mx)
    else:
        # General path: for phase offset (jy, jx), taps are ky = ry + s*ty with
        # ry = (jy+p) % s, and the input row for output index m is (jy+p)//s + m - ty.
        # Build a small per-phase im2col (Ce = KT*KT*Cin channels) in the wrapper; the
        # kernel does one batched (P, Cout, Ce) x (P, Ce, M) matmul per image.
        KT = -(-K // s)
        Ce = KT * KT * Cin
        t0max = (s - 1 + p) // s
        pad_lo = KT - 1
        pad_hi_y = max(0, t0max + My - H)
        pad_hi_x = max(0, t0max + Mx - W)
        xpad = jnp.pad(x, ((0, 0), (0, 0), (pad_lo, pad_hi_y), (pad_lo, pad_hi_x)))
        xs, ws = [], []
        for jy in range(s):
            ry, t0y = (jy + p) % s, (jy + p) // s
            for jx in range(s):
                rx, t0x = (jx + p) % s, (jx + p) // s
                tap_x, tap_w = [], []
                for ty in range(KT):
                    for tx in range(KT):
                        ky, kx = ry + s * ty, rx + s * tx
                        if ky < K and kx < K:
                            tap_w.append(jnp.transpose(w_eff[:, :, ky, kx]))   # (Cout, Cin)
                        else:
                            tap_w.append(jnp.zeros((Cout, Cin), jnp.float32))
                        sy, sx = t0y - ty + pad_lo, t0x - tx + pad_lo
                        tap_x.append(lax.slice(xpad, (0, 0, sy, sx),
                                               (N, Cin, sy + My, sx + Mx)))
                xs.append(jnp.concatenate(tap_x, axis=1).reshape(N, Ce, M))
                ws.append(jnp.concatenate(tap_w, axis=1))                      # (Cout, Ce)
        Xp = jnp.stack(xs, axis=1).astype(jnp.bfloat16)                        # (N, P, Ce, M)
        Wp = jnp.stack(ws, axis=0).astype(jnp.bfloat16)                        # (P, Cout, Ce)

        out_k = pl.pallas_call(
            _phase_batched_matmul_bn_relu_kernel,
            out_shape=jax.ShapeDtypeStruct((N, P, Cout, M), jnp.float32),
            grid_spec=pltpu.PrefetchScalarGridSpec(
                num_scalar_prefetch=0,
                grid=(N, n_mt),
                in_specs=[
                    pl.BlockSpec((1, P, Ce, Mt), lambda n, m: (n, 0, 0, m)),
                    pl.BlockSpec((P, Cout, Ce), lambda n, m: (0, 0, 0)),     # resident
                    pl.BlockSpec((Cout, 1), lambda n, m: (0, 0)),            # resident
                ],
                out_specs=pl.BlockSpec((1, P, Cout, Mt), lambda n, m: (n, 0, 0, m)),
            ),
            compiler_params=compiler_params,
        )(Xp, Wp, shift2d)
        out = out_k.reshape(N, s, s, Cout, My, Mx)

    # Pixel-shuffle interleave of the s*s phases back into NCHW (small XLA op).
    out = jnp.transpose(out, (0, 3, 4, 1, 5, 2)).reshape(N, Cout, My * s, Mx * s)
    return out[:, :, :Hout, :Wout]


def _reference(x, w_t, gamma, beta, run_mean, run_var, *, stride, padding, eps=1e-3):
    """Pure-JAX reference (ConvTranspose2d == lhs-dilated conv with flipped kernel).

    BN is folded and operands are bf16-rounded exactly like the kernel does, so the
    check validates the phase / indexing math rather than bf16 quantization error.
    """
    Cout = w_t.shape[1]
    K = w_t.shape[2]
    inv_std = gamma / jnp.sqrt(run_var + eps)
    shift = (beta - run_mean * inv_std).reshape(1, Cout, 1, 1)
    w_eff = (w_t.astype(jnp.float32) * inv_std.reshape(1, Cout, 1, 1))
    w_eff = w_eff.astype(jnp.bfloat16).astype(jnp.float32)
    xq = x.astype(jnp.bfloat16).astype(jnp.float32)
    w_oihw_flip = jnp.transpose(jnp.flip(w_eff, axis=(2, 3)), (1, 0, 2, 3))
    conv = lax.conv_general_dilated(
        xq, w_oihw_flip, window_strides=(1, 1),
        padding=[(K - 1 - padding,) * 2] * 2,
        lhs_dilation=(stride, stride),
        dimension_numbers=("NCHW", "OIHW", "NCHW"),
        precision=lax.Precision.HIGHEST)
    return jnp.maximum(conv + shift, 0.0)


if __name__ == "__main__":
    key = jax.random.PRNGKey(0)
    k_x, k_w, k_g, k_b, k_m, k_v, k_w2 = jax.random.split(key, 7)

    in_planes, out_planes = 4, 8
    N, H, W = 2, 16, 16

    x = jax.random.normal(k_x, (N, in_planes, H, W), jnp.float32)
    gamma = 1.0 + 0.1 * jax.random.normal(k_g, (out_planes,), jnp.float32)
    beta = 0.05 * jax.random.normal(k_b, (out_planes,), jnp.float32)
    run_mean = 0.1 * jax.random.normal(k_m, (out_planes,), jnp.float32)
    run_var = 1.0 + 0.1 * jax.random.uniform(k_v, (out_planes,), jnp.float32)

    # --- Case 1: fast path (kernel_size=2, stride=2, padding=0) — the module config. ---
    K1, s1, p1 = 2, 2, 0
    w1 = 0.1 * jax.random.normal(k_w, (in_planes, out_planes, K1, K1), jnp.float32)
    out1 = basic_trans_conv2d(x, w1, gamma, beta, run_mean, run_var,
                              stride=s1, padding=p1)
    out1 = jax.block_until_ready(out1)
    ref1 = _reference(x, w1, gamma, beta, run_mean, run_var, stride=s1, padding=p1)
    Hout1 = (H - 1) * s1 - 2 * p1 + K1
    assert out1.shape == (N, out_planes, Hout1, Hout1), out1.shape
    assert jnp.allclose(out1, ref1, atol=2e-3, rtol=2e-3), \
        float(jnp.max(jnp.abs(out1 - ref1)))

    # --- Case 2: general path (kernel_size=3, stride=2, padding=1). ---
    K2, s2, p2 = 3, 2, 1
    w2 = 0.1 * jax.random.normal(k_w2, (in_planes, out_planes, K2, K2), jnp.float32)
    out2 = basic_trans_conv2d(x, w2, gamma, beta, run_mean, run_var,
                              stride=s2, padding=p2)
    out2 = jax.block_until_ready(out2)
    ref2 = _reference(x, w2, gamma, beta, run_mean, run_var, stride=s2, padding=p2)
    Hout2 = (H - 1) * s2 - 2 * p2 + K2
    assert out2.shape == (N, out_planes, Hout2, Hout2), out2.shape
    assert jnp.allclose(out2, ref2, atol=2e-3, rtol=2e-3), \
        float(jnp.max(jnp.abs(out2 - ref2)))

    print("KERNEL_OK")
</pallas_src>

<mosaic_0001>
module attributes {stable_mosaic.version = 11 : i64} {
  func.func @_stacked_matmul_bn_relu_kernel(%arg0: i32, %arg1: i32, %arg2: memref<1x4x256xbf16, #tpu.memory_space<vmem>>, %arg3: memref<32x4xbf16, #tpu.memory_space<vmem>>, %arg4: memref<32x1xf32, #tpu.memory_space<vmem>>, %arg5: memref<1x32x256xf32, #tpu.memory_space<vmem>>) attributes {dimension_semantics = [#tpu.dimension_semantics<parallel>, #tpu.dimension_semantics<parallel>], iteration_bounds = array<i64: 2, 1>, scalar_prefetch = 0 : i64, scratch_operands = 0 : i64, tpu.core_type = #tpu.core_type<tc>, window_params = [{transform_indices = @transform_0, window_bounds = array<i64: 1, 4, 256>}, {pipeline_mode = #tpu.pipeline_mode<synchronous>, transform_indices = @transform_1, window_bounds = array<i64: 32, 4>}, {pipeline_mode = #tpu.pipeline_mode<synchronous>, transform_indices = @transform_2, window_bounds = array<i64: 32, 1>}, {transform_indices = @transform_3, window_bounds = array<i64: 1, 32, 256>}]} {
    %c0 = arith.constant 0 : index
    %c0_0 = arith.constant 0 : index
    %0 = vector.load %arg3[%c0, %c0_0] : memref<32x4xbf16, #tpu.memory_space<vmem>>, vector<32x4xbf16>
    %c0_1 = arith.constant 0 : index
    %c0_2 = arith.constant 0 : index
    %c0_3 = arith.constant 0 : index
    %1 = vector.load %arg2[%c0_1, %c0_2, %c0_3] : memref<1x4x256xbf16, #tpu.memory_space<vmem>>, vector<1x4x256xbf16>
    %2 = vector.shape_cast %1 : vector<1x4x256xbf16> to vector<4x256xbf16>
    %cst = arith.constant dense<0.000000e+00> : vector<32x256xf32>
    %3 = tpu.matmul %0, %2, %cst {dimension_numbers = #tpu.dot_dimension_numbers<[1], [0], [0], [1], [0, 0, 1, 1], [], []>} : vector<32x4xbf16>, vector<4x256xbf16>, vector<32x256xf32> -> vector<32x256xf32>
    %c0_4 = arith.constant 0 : index
    %c0_5 = arith.constant 0 : index
    %4 = vector.load %arg4[%c0_4, %c0_5] : memref<32x1xf32, #tpu.memory_space<vmem>>, vector<32x1xf32>
    %5 = vector.broadcast %4 : vector<32x1xf32> to vector<32x256xf32>
    %6 = arith.addf %3, %5 : vector<32x256xf32>
    %cst_6 = arith.constant 0.000000e+00 : f32
    %7 = vector.broadcast %cst_6 : f32 to vector<32x256xf32>
    %8 = arith.maximumf %6, %7 : vector<32x256xf32>
    %c0_7 = arith.constant 0 : index
    %c0_8 = arith.constant 0 : index
    %c0_9 = arith.constant 0 : index
    %9 = vector.load %arg5[%c0_7, %c0_8, %c0_9] : memref<1x32x256xf32, #tpu.memory_space<vmem>>, vector<1x32x256xf32>
    %10 = vector.shape_cast %9 : vector<1x32x256xf32> to vector<32x256xf32>
    %11 = vector.shape_cast %8 : vector<32x256xf32> to vector<1x32x256xf32>
    tpu.vector_store %arg5[%c0_7, %c0_8, %c0_9], %11 {strides = array<i32>} : memref<1x32x256xf32, #tpu.memory_space<vmem>>, vector<1x32x256xf32>,
    return
  }
  func.func @transform_0(%arg0: i32, %arg1: i32) -> (i32, i32, i32) {
    %c0_i32 = arith.constant 0 : i32
    %c0_i32_0 = arith.constant 0 : i32
    return %arg0, %c0_i32, %arg1 : i32, i32, i32
  }
  func.func @transform_1(%arg0: i32, %arg1: i32) -> (i32, i32) {
    %c0_i32 = arith.constant 0 : i32
    %c0_i32_0 = arith.constant 0 : i32
    %c0_i32_1 = arith.constant 0 : i32
    return %c0_i32, %c0_i32_0 : i32, i32
  }
  func.func @transform_2(%arg0: i32, %arg1: i32) -> (i32, i32) {
    %c0_i32 = arith.constant 0 : i32
    %c0_i32_0 = arith.constant 0 : i32
    %c0_i32_1 = arith.constant 0 : i32
    return %c0_i32, %c0_i32_0 : i32, i32
  }
  func.func @transform_3(%arg0: i32, %arg1: i32) -> (i32, i32, i32) {
    %c0_i32 = arith.constant 0 : i32
    %c0_i32_0 = arith.constant 0 : i32
    return %arg0, %c0_i32, %arg1 : i32, i32, i32
  }
}

</mosaic_0001>

<bundles_post_ra>
// kernel: tpu_custom_call.1
= control target key start
LH: loop header
LB: loop body
LE: loop exit
PB: predicated region body
PF: predicated region fallthrough
CT: control target
= control target key end

     0   :  { %8 = vsyncpa [#allocation3], 0  ;;  %s731_s0 = inlined_call_operand.vmem [shape: bf16[2,4,256], index: 0, kind: input, shape index: {}]   ;;  %s732_s1 = inlined_call_operand.vmem [shape: bf16[32,4], index: 1, kind: input, shape index: {}]   ;;  %s733_s2 = inlined_call_operand.vmem [shape: f32[32,1], index: 2, kind: input, shape index: {}]   ;;  %s734_s3 = inlined_call_operand.hbm [shape: f32[2,32,256], index: 3, kind: output, shape index: {}]  }
   0x1   :  { %10 = vsyncpa [#allocation3 + $0x1], 0  ;;  %s601_s12 = smov 0   ;;  %s603_s13 = smov 0  }
   0x2   :  { %s605_s14 = smov 0   ;;  %s607_s15 = smov 0  }
   0x3   :  { %s609_s16 = smov 0   ;;  %s611_s17 = smov 0  }
   0x4 LB: > { %s407_s18 = sadd.s32 4294967295, %s576_s17   ;;  %s408_s19 = sadd.s32 4294967294, %s576_s17   ;;  %s576_s17 = sphi %s611_s17, %s16_s17   ;;  %s572_s16 = sphi %s609_s16, %s741_s16   ;;  %s568_s15 = sphi %s607_s15, %s740_s15   ;;  %s564_s14 = sphi %s605_s14, %s739_s14   ;;  %s560_s13 = sphi %s603_s13, %s738_s13   ;;  %s556_s12 = sphi %s601_s12, %s737_s12  }
   0x5   : > { %s28_s20 = sadd.s32 1, %s572_s16  ;;  %s107_s21 = sadd.s32 1, %s564_s14 }
   0x6   : > { %p30_p0 = scmp.ge.s32.totalorder %s28_s20, 2  ;;  %p117_p1 = scmp.ne.s32.totalorder %s564_s14, %s560_s13 }
   0x7   : > { %p118_p2 = scmp.eq.s32.totalorder %s407_s18, 1  ;;  %p123_p3 = scmp.ne.s32.totalorder %s560_s13, %s556_s12 }
   0x8   : > { %s743_s20 = smov (%p30_p0, %s28_s20), 0  ;;  %p124_p5 = scmp.eq.s32.totalorder %s408_s19, 1 }
   0x9   : > { %p641_p4 = por %p118_p2, %p117_p1  ;;  %s102_s23 = ssub.s32 %s572_s16, %s743_s20 }
   0xa   : > { %p411_p6 = scmp.ge.s32.totalorder %s576_s17, 1  ;;  %p105_p7 = scmp.eq.s32.totalorder %s102_s23, 0 }
   0xb   : > { %p648_p8 = por %p124_p5, %p123_p3  ;;  %p161_p9 = scmp.lt.s32.totalorder %s576_s17, 3 }
   0xc   : > { %s654_s25 = scalar_select %p105_p7, %s564_s14, %s107_s21  }
   0xd   : > { %p162_p10 = pnand %p411_p6, %p161_p9 }
   0xe   : > { %p190_p11 = scmp.lt.s32.totalorder (!%p162_p10), %s568_s15, 1  ;;  %s186_s26 = sand.u32 (!%p162_p10), 1, %s560_s13  }
   0xf   : > { %165 = sbr.rel (%p162_p10) target bundleno = 186 (0xba), region = 32  ;;  %s412_s27 = sshll.u32 (!%p162_p10), %s186_s26, 6 }
  0x10   : > { %s682_s28 = scalar_lea.vmem (!%p162_p10), [#allocation2], %s412_s27  ;;  %s435_s29 = sshll.u32 (!%p162_p10), %s568_s15, 6 }
  0x11   : > { %s324_s5 = scalar_lea.hbm (!%p162_p10), %s734_s3, %s435_s29  ;;  %s518_s18 = scalar_lea.hbm (!%p162_p10), %s734_s3, 128 }
  0x12   : > { %s327_s6 = sshll.u32 (!%p162_p10), %s324_s5, 4  ;;  %s328_s6 = int_to_ptr.hbm [resolvable:$true] %s327_s6 }
  0x13   : > { %s512_s8 = sshra.s32 (!%p162_p10), %s328_s6, 4  ;;  %s513_s8 = int_to_ptr.hbm [resolvable:$true] %s512_s8 }
  0x14   : > { %v578_v0 = vmov 0   ;;  %v208_v1 = vld [vmem:[%s733_s2 + $0x10] sm:$0xff]  ;;  %v206_v2 = vld [vmem:[%s733_s2] sm:$0xff]  ;;  %s191_s30 = scalar_select %p190_p11, %s568_s15, 1  ;;  %v209_v4 = vld [vmem:[%s733_s2 + $0x18] sm:$0xff]  ;;  %vm251_vm0 = vcmask 1041408  }
  0x15   : > { %497 = vset.pattern.permute.xlu1 %v578_v0  ;;  %496 = vset.pattern.permute.xlu0 %v578_v0  ;;  %v207_v5 = vld [vmem:[%s733_s2 + $0x8] sm:$0xff]  ;;  %v433_v10 = vld [vmem:[%s732_s1] sm:$0xff]  ;;  %vm244_vm1 = vcmask 31744   ;;  %s325_s15 = sshll.u32 %s682_s28, 4  ;;  %s514_s9 = scalar_lea.hbm %s513_s8, 64  ;;  %s326_s15 = int_to_ptr.vmem [resolvable:$true] %s325_s15 }
  0x16   : > { %222 = vperm.xlu1 %497, %v208_v1   ;;  %212 = vperm.xlu0 %496, %v206_v2   ;;  %s432_s4 = sshll.u32 %s191_s30, 2  ;;  %v434_v11 = vld [vmem:[%s732_s1 + $0x8] sm:$0xff]  ;;  %p515_p12 = scmp.ne.s32.totalorder %s513_s8, %s514_s9 }
  0x17   : > { %s197_s7 = scalar_lea.vmem %s731_s0, %s432_s4  ;;  %p519_p1 = scmp.lt.s32.totalorder %s513_s8, %s734_s3 }
  0x18   : > { %v205_v3 = vld [vmem:[%s197_s7] sm:$0xf]  ;;  %s311_s7 = scalar_lea.sflag [#allocation3], %s186_s26  ;;  %p516_p13 = pnand %p515_p12, %p641_p4 }
  0x19   : > { %241 = vst [vmem:[#allocation1] ss:$4 sm:$0xff] %v205_v3  ;;  %p520_p2 = scmp.lt.s32.totalorder %s518_s18, %s514_s9 }
  0x1a   : > { %p517_p0 = pneg %p516_p13 }
  0x1b   : > { %p521_p3 = por %p520_p2, %p519_p1 }
  0x1d   : > { %p522_p5 = pnand %p521_p3, %p517_p0 }
  0x1e   : > { %227 = vperm.xlu1 %497, %v209_v4   ;;  %217 = vperm.xlu0 %496, %v207_v5  }
  0x20   : > { %v242_v6 = vld.sshfl [vmem:[#allocation1] sm:$0xff pattern:$0x73625140]  ;;  %v243_v7 = vld.sshfl [vmem:[#allocation1 + $0x8] sm:$0xff pattern:$0x73625140] }
  0x21   : > { %v252_v8 = vsel %vm251_vm0, %v242_v6, 0  ;;  %v254_v9 = vsel %vm251_vm0, %v243_v7, 0 }
  0x22   : > { %263 = vmatpush.bf16.msra.mxu0 %v252_v8  ;;  %436 = vmatpush.bf16.msra.mxu2 %v252_v8 }
  0x23   : > { %282 = vmatpush.bf16.msra.mxu1 %v254_v9  ;;  %437 = vmatpush.bf16.msra.mxu3 %v254_v9 }
  0x25   : > { %423 = vmatmul.msk.bf16.vlgmr.msra.gmra.mxu0 %vm244_vm1, %v433_v10  ;;  %424 = vmatmul.msk.bf16.vlgmr.msra.gmra.mxu2 %vm244_vm1, %v434_v11 }
  0x26   : > { %425 = vmatmul.msk.bf16.vlgmr.msra.gmra.mxu1 %vm244_vm1, %v433_v10  ;;  %426 = vmatmul.msk.bf16.vlgmr.msra.gmra.mxu3 %vm244_vm1, %v434_v11 }
  0x88   : > { %v213_v12 = vpop.permute.xlu0 %212  ;;  %v223_v18 = vpop.permute.xlu1 %222 }
  0x90   : > { %v218_v23 = vpop.permute.xlu0 %217  ;;  %v228_v33 = vpop.permute.xlu1 %227 }
  0xa2   : > { %v265_v13 = vpop.f32.mrf.mxu0 }
  0xa3   : > { %v266_v14 = vadd.f32 %v265_v13, %v213_v12  ;;  %v284_v15 = vpop.f32.mrf.mxu1 }
  0xa4   : > { %v285_v16 = vadd.f32 %v284_v15, %v213_v12 }
  0xa5   : > { %v294_v17 = vmax.f32 %v266_v14, 0.0 }
  0xa6   : > { %v295_v19 = vmax.f32 %v285_v16, 0.0 }
  0xa7   : > { %302 = vst [vmem:[%s682_s28] sm:$0xff] %v294_v17 }
  0xa8   : > { %303 = vst [vmem:[%s682_s28 + $0x8] sm:$0xff] %v295_v19  ;;  %v270_v20 = vpop.f32.mrf.mxu2 }
  0xa9   : > { %v271_v21 = vadd.f32 %v270_v20, %v223_v18  ;;  %v289_v22 = vpop.f32.mrf.mxu3 }
  0xaa   : > { %v290_v24 = vadd.f32 %v289_v22, %v223_v18  ;;  %v267_v25 = vpop.f32.mrf.mxu0 }
  0xab   : > { %v298_v26 = vmax.f32 %v271_v21, 0.0  ;;  %v268_v27 = vadd.f32 %v267_v25, %v218_v23  ;;  %v286_v28 = vpop.f32.mrf.mxu1 }
  0xac   : > { %v299_v29 = vmax.f32 %v290_v24, 0.0  ;;  %v287_v30 = vadd.f32 %v286_v28, %v218_v23 }
  0xad   : > { %306 = vst [vmem:[%s682_s28 + $0x20] sm:$0xff] %v298_v26  ;;  %v296_v31 = vmax.f32 %v268_v27, 0.0 }
  0xae   : > { %307 = vst [vmem:[%s682_s28 + $0x28] sm:$0xff] %v299_v29  ;;  %v297_v32 = vmax.f32 %v287_v30, 0.0 }
  0xaf   : > { %304 = vst [vmem:[%s682_s28 + $0x10] sm:$0xff] %v296_v31 }
  0xb0   : > { %305 = vst [vmem:[%s682_s28 + $0x18] sm:$0xff] %v297_v32  ;;  %v272_v34 = vpop.f32.mrf.mxu2 }
  0xb1   : > { %v273_v35 = vadd.f32 %v272_v34, %v228_v33  ;;  %v291_v36 = vpop.f32.mrf.mxu3 }
  0xb2   : > { %v292_v37 = vadd.f32 %v291_v36, %v228_v33 }
  0xb3   : > { %v300_v38 = vmax.f32 %v273_v35, 0.0 }
  0xb4   : > { %v301_v39 = vmax.f32 %v292_v37, 0.0 }
  0xb5   : > { %308 = vst [vmem:[%s682_s28 + $0x30] sm:$0xff] %v300_v38 }
  0xb6   : > { %309 = vst [vmem:[%s682_s28 + $0x38] sm:$0xff] %v301_v39 }
  0xb7   : > { %525 = shalt.err (!%p522_p5)
}
  0xb8   : > { %s579_s23 = smov 256   ;;  %s580_s26 = smov 16  }
  0xb9   : > { %438 = dma.vmem_to_hbm [thread:$0]  (%p641_p4), %s326_s15, 1024, %s328_s6, %s311_s7, %s579_s23, %s579_s23, %s580_s26  }
  0xba PF: > { %p444_p6 = scmp.ge.s32.totalorder %s576_s17, 2  ;;  %s342_s27 = sand.u32 1, %s556_s12  }
  0xbb   : > { %s343_s28 = scalar_lea.sflag [#allocation3], %s342_s27 }
  0xbc   : > { %p441_p7 = pnand %p444_p6, %p648_p8 }
  0xbe   : > { %p442_p9 = pneg %p441_p7 }
  0xc0   : > { %551 = dma.done.wait (%p442_p9), %s343_s28, 1024  }
  0xc1   : > { %553 = vsyncadd (%p442_p9), %s343_s28, 4294966272  ;;  %s16_s17 = sadd.s32 1, %s576_s17   ;;  %s737_s12 = smov %s560_s13 }
  0xc2   : > { %p13_p10 = scmp.ge.s32.totalorder %s16_s17, 4   ;;  %s738_s13 = smov %s564_s14 }
  0xc3   : > { %s739_s14 = smov %s654_s25  ;;  %s740_s15 = smov %s572_s16 }
  0xc4   : > { %s741_s16 = smov %s743_s20  ;;  %15 = sbr.rel (!%p13_p10) target bundleno = 4 (0x4), region = 67 }
  0xc9   :  { %349 = vsyncpa [#allocation3], 1 }
  0xca   :  { %351 = vsyncpa [#allocation3 + $0x1], 1 }

</bundles_post_ra>
